<compile_context>
chip_gen: v6e
topology: v6e:2x2x1
jax: 0.10.0
libtpu: 0.0.40
codegen_flags: <defaults>
</compile_context>

<pallas_src>
import jax
import jax.numpy as jnp
from jax.experimental import pallas as pl
from jax.experimental.pallas import tpu as pltpu


def affine_kernel(xT_ref, w_ref, b_ref, o_ref):
    # xT_ref: (10, TILE_B)   features x batch (batch on lanes)
    # w_ref : (10, 1)        folded weight
    # b_ref : (1, 1)         folded bias
    # o_ref : (1, TILE_B)    lane-dense output
    x = xT_ref[...]
    w = w_ref[...]                                   # broadcast along lanes
    y = jnp.sum(x * w, axis=0, keepdims=True)        # VPU mul + sublane reduce
    o_ref[...] = (y + b_ref[...]).astype(o_ref.dtype)


def mlp_forward(x, w1, b1, w2, b2, w3, b3, *, tile_b=128):
    """Forward pass of S.  x: (batch, 10) f32 -> (batch, 1) f32."""
    # Fold the affine chain once (plain JAX, negligible cost, identical math).
    w_eff = w1 @ w2 @ w3                      # (10, 1)
    b_eff = (b1 @ w2 + b2) @ w3 + b3          # (1, 1)

    batch, in_feat = x.shape
    b_pad = pl.cdiv(batch, tile_b) * tile_b

    # Transpose + pad so batch sits on the 128-lane axis (lane-dense I/O).
    xT = jnp.pad(x.T, ((0, 0), (0, b_pad - batch)))   # (10, b_pad)

    out = pl.pallas_call(
        affine_kernel,
        out_shape=jax.ShapeDtypeStruct((1, b_pad), jnp.float32),
        grid=(b_pad // tile_b,),
        in_specs=[
            pl.BlockSpec((in_feat, tile_b), lambda i: (0, i)),  # x tile
            pl.BlockSpec(w_eff.shape, lambda i: (0, 0)),        # folded W (full)
            pl.BlockSpec(b_eff.shape, lambda i: (0, 0)),        # folded b (full)
        ],
        out_specs=pl.BlockSpec((1, tile_b), lambda i: (0, i)),
        compiler_params=pltpu.CompilerParams(
            dimension_semantics=("parallel",)),                 # 2 TCs on v7x
    )(xT, w_eff, b_eff)

    return out[0, :batch].reshape(batch, 1)


def init_params(key):
    """Deterministic synthetic init matching nn.Linear shapes.
    Weights stored as (in, out); biases as (1, out)."""
    k1, k2, k3, k4, k5, k6 = jax.random.split(key, 6)
    w1 = jax.random.normal(k1, (10, 20), jnp.float32) * 0.1
    b1 = jax.random.normal(k2, (1, 20), jnp.float32) * 0.1
    w2 = jax.random.normal(k3, (20, 30), jnp.float32) * 0.1
    b2 = jax.random.normal(k4, (1, 30), jnp.float32) * 0.1
    w3 = jax.random.normal(k5, (30, 1), jnp.float32) * 0.1
    b3 = jax.random.normal(k6, (1, 1), jnp.float32) * 0.1
    return w1, b1, w2, b2, w3, b3


if __name__ == "__main__":
    key = jax.random.PRNGKey(0)
    kx, kp = jax.random.split(key)
    batch = 8
    x = jax.random.normal(kx, (batch, 10), jnp.float32)
    params = init_params(kp)

    out = mlp_forward(x, *params)
    out = jax.block_until_ready(out)

    # Reference in plain JAX (unfused three-layer chain).
    w1, b1, w2, b2, w3, b3 = params
    ref = ((x @ w1 + b1) @ w2 + b2) @ w3 + b3
    assert out.shape == (batch, 1)
    assert jnp.allclose(out, ref, atol=1e-4, rtol=1e-4), (out, ref)

    print("KERNEL_OK")
</pallas_src>

<mosaic_0001>
module attributes {stable_mosaic.version = 11 : i64} {
  func.func @affine_kernel(%arg0: i32, %arg1: memref<10x128xf32, #tpu.memory_space<vmem>>, %arg2: memref<10x1xf32, #tpu.memory_space<vmem>>, %arg3: memref<1x1xf32, #tpu.memory_space<vmem>>, %arg4: memref<1x128xf32, #tpu.memory_space<vmem>>) attributes {dimension_semantics = [#tpu.dimension_semantics<parallel>], iteration_bounds = array<i64: 1>, scalar_prefetch = 0 : i64, scratch_operands = 0 : i64, tpu.core_type = #tpu.core_type<tc>, window_params = [{transform_indices = @transform_0, window_bounds = array<i64: 10, 128>}, {pipeline_mode = #tpu.pipeline_mode<synchronous>, transform_indices = @transform_1, window_bounds = array<i64: 10, 1>}, {pipeline_mode = #tpu.pipeline_mode<synchronous>, transform_indices = @transform_2, window_bounds = array<i64: 1, 1>}, {transform_indices = @transform_3, window_bounds = array<i64: 1, 128>}]} {
    %c0 = arith.constant 0 : index
    %c0_0 = arith.constant 0 : index
    %0 = vector.load %arg1[%c0, %c0_0] : memref<10x128xf32, #tpu.memory_space<vmem>>, vector<10x128xf32>
    %c0_1 = arith.constant 0 : index
    %c0_2 = arith.constant 0 : index
    %1 = vector.load %arg2[%c0_1, %c0_2] : memref<10x1xf32, #tpu.memory_space<vmem>>, vector<10x1xf32>
    %2 = vector.broadcast %1 : vector<10x1xf32> to vector<10x128xf32>
    %3 = arith.mulf %0, %2 : vector<10x128xf32>
    %cst = arith.constant dense<0.000000e+00> : vector<128xf32>
    %4 = vector.multi_reduction <add>, %3, %cst [0] : vector<10x128xf32> to vector<128xf32>
    %5 = vector.shape_cast %4 : vector<128xf32> to vector<1x128xf32>
    %c0_3 = arith.constant 0 : index
    %c0_4 = arith.constant 0 : index
    %6 = vector.load %arg3[%c0_3, %c0_4] : memref<1x1xf32, #tpu.memory_space<vmem>>, vector<1x1xf32>
    %7 = vector.broadcast %6 : vector<1x1xf32> to vector<1x128xf32>
    %8 = arith.addf %5, %7 : vector<1x128xf32>
    %c0_5 = arith.constant 0 : index
    %c0_6 = arith.constant 0 : index
    %9 = vector.load %arg4[%c0_5, %c0_6] : memref<1x128xf32, #tpu.memory_space<vmem>>, vector<1x128xf32>
    tpu.vector_store %arg4[%c0_5, %c0_6], %8 {strides = array<i32>} : memref<1x128xf32, #tpu.memory_space<vmem>>, vector<1x128xf32>,
    return
  }
  func.func @transform_0(%arg0: i32) -> (i32, i32) {
    %c0_i32 = arith.constant 0 : i32
    %c0_i32_0 = arith.constant 0 : i32
    return %c0_i32, %arg0 : i32, i32
  }
  func.func @transform_1(%arg0: i32) -> (i32, i32) {
    %c0_i32 = arith.constant 0 : i32
    %c0_i32_0 = arith.constant 0 : i32
    %c0_i32_1 = arith.constant 0 : i32
    return %c0_i32, %c0_i32_0 : i32, i32
  }
  func.func @transform_2(%arg0: i32) -> (i32, i32) {
    %c0_i32 = arith.constant 0 : i32
    %c0_i32_0 = arith.constant 0 : i32
    %c0_i32_1 = arith.constant 0 : i32
    return %c0_i32, %c0_i32_0 : i32, i32
  }
  func.func @transform_3(%arg0: i32) -> (i32, i32) {
    %c0_i32 = arith.constant 0 : i32
    %c0_i32_0 = arith.constant 0 : i32
    return %c0_i32, %arg0 : i32, i32
  }
}

</mosaic_0001>

<bundles_post_ra>
// kernel: tpu_custom_call.1
= control target key start
LH: loop header
LB: loop body
LE: loop exit
PB: predicated region body
PF: predicated region fallthrough
CT: control target
= control target key end

     0   :  { %s134_s0 = inlined_call_operand.vmem [shape: f32[10,128], index: 0, kind: input, shape index: {}]   ;;  %s135_s1 = inlined_call_operand.vmem [shape: f32[10,1], index: 1, kind: input, shape index: {}]   ;;  %s136_s2 = inlined_call_operand.<no memory space> [shape: f32[1,1], index: 2, kind: input, shape index: {}]   ;;  %s137_s3 = inlined_call_operand.hbm [shape: f32[1,128], index: 3, kind: output, shape index: {}]  }
   0x1   :  { %v8_v0 = vstv %s136_s2 }
   0x2   :  { %9 = vst [vmem:[#allocation2] sm:$0x1] %v8_v0 }
   0x3   :  { %v20_v1 = vld [vmem:[%s135_s1 + $0x8] sm:$0x3]  ;;  %v94_v3 = vmov 0  }
   0x4   :  { %70 = vset.pattern.permute.xlu0 %v94_v3  ;;  %71 = vset.pattern.permute.xlu1 %v94_v3 }
   0x9   :  { %v42_v2 = vld [vmem:[#allocation2] sm:$0x1] }
   0xa   :  { %10 = vsyncpa [#allocation4], 0  ;;  %28 = vperm.xlu0 %70, %v20_v1   ;;  %45 = vperm.xlu1 %71, %v42_v2   ;;  %v19_v4 = vld [vmem:[%s135_s1] sm:$0xff]  ;;  %v18_v5 = vld [vmem:[%s134_s0 + $0x8] sm:$0x3]  ;;  %vm33_vm0 = vcmask 1041408   ;;  %v48_v11 = vlaneseq }
   0xb   :  { %v17_v8 = vld [vmem:[%s134_s0] sm:$0xff]  ;;  %s95_s1 = smov [#allocation3]  }
   0xc   :  { %v49_v15 = vshrl.u32 %v48_v11, 7  ;;  %s60_s21 = sshll.u32 %s95_s1, 4  ;;  %s61_s21 = int_to_ptr.vmem [resolvable:$true] %s60_s21 }
   0xd   :  { %s72_s0 = scalar_lea.vmem %s61_s21, 16  ;;  %s76_s22 = scalar_lea.vmem %s61_s21, 32 }
   0xe   :  { %23 = vperm.xlu0 %70, %v19_v4   ;;  %v50_v18 = vsub.s32 0, %v49_v15  ;;  %p73_p0 = scmp.ne.s32.totalorder %s61_s21, %s72_s0  ;;  %p77_p1 = scmp.lt.s32.totalorder %s61_s21, %s61_s21 }
   0xf   :  { %p78_p2 = scmp.lt.s32.totalorder %s76_s22, %s72_s0 }
  0x11   :  { %p79_p3 = por %p78_p2, %p77_p1 }
  0x13   :  { %p80_p4 = pnand %p79_p3, %p73_p0 }
  0x85   :  { %v29_v6 = vpop.permute.xlu0 %28  ;;  %v46_v19 = vpop.permute.xlu1 %45 }
  0x86   :  { %v32_v7 = vmul.f32 %v29_v6, %v18_v5  ;;  %v51_v21 = vrot.slane %v46_v19, %v50_v18 }
  0x88   :  { %v34_v12 = vsel %vm33_vm0, %v32_v7, 0.0 }
  0x89   :  { %v24_v9 = vpop.permute.xlu0 %23 }
  0x8a   :  { %v31_v10 = vmul.f32 %v24_v9, %v17_v8 }
  0x8c   :  { %v35_v13 = vadd.f32 %v34_v12, %v31_v10 }
  0x8e   :  { %v36_v14 = vrot.slane %v35_v13, 4 }
  0x90   :  { %v37_v16 = vadd.f32 %v36_v14, %v35_v13 }
  0x92   :  { %v38_v17 = vrot.slane %v37_v16, 2 }
  0x94   :  { %v39_v20 = vadd.f32 %v38_v17, %v37_v16 }
  0x96   :  { %v40_v22 = vrot.slane %v39_v20, 1 }
  0x98   :  { %v41_v23 = vadd.f32 %v40_v22, %v39_v20 }
  0x9a   :  { %v52_v24 = vadd.f32 %v51_v21, %v41_v23 }
  0x9c   :  { %53 = vst [vmem:[#allocation3] sm:$0x1] %v52_v24 }
  0x9d   :  { %83 = shalt.err (!%p80_p4)
}
  0x9e   :  { %63 = dma.vmem_to_hbm [thread:$0]  %s61_s21, 16, %s137_s3, [#allocation4]  }
  0x9f   :  { %92 = dma.done.wait [#allocation4], 16  }
  0xa0   :  { %93 = vsyncadd [#allocation4], 4294967280 }
  0xa1   :  { %67 = vsyncpa [#allocation4], 1 }

</bundles_post_ra>
